<compile_context>
chip_gen: v6e
topology: v6e:2x2x1
jax: 0.10.0
libtpu: 0.0.40
codegen_flags: <defaults>
</compile_context>

<pallas_src>
import functools

import jax
import jax.numpy as jnp
import numpy as np
from jax.experimental import pallas as pl
from jax.experimental.pallas import tpu as pltpu


# --------------------------------- kernel -----------------------------------

def _affine_block_kernel(
    xp_ref, c_ref,
    whA_ref, bhA_ref, w0uA_ref, w0hA_ref, b0A_ref, w1A_ref, b1A_ref,
    whB_ref, bhB_ref, w0uB_ref, w0hB_ref, b0B_ref, w1B_ref, b1B_ref,
    v_ref, ld_ref, *, sz1, sz2,
):
    """One grid step: full coupling block on a transposed (features, tm) tile.

    xp_ref : (n_param, tm)  already-permuted param rows (rows in lanes).
    c_ref  : (cond_sz, tm)  conditioning rows (rows in lanes).
    Group A = fused (s1, t1) acting on u2, outputs sz1 each.
    Group B = fused (s2, t2) acting on v1, outputs sz2 each.
    Fused weights (built in the wrapper, bf16; biases f32):
      wh  : (2*head, cond_sz)       bh  : (2*head, 1)
      w0u : (2*feat, in_sz)         w0h : (2*feat, 2*head)   [block-diag]
      b0  : (2*feat, 1)             w1  : (2*out, 2*feat)    [block-diag]
      b1  : (2*out, 1)
    """
    f32 = jnp.float32
    bf16 = jnp.bfloat16

    xp = xp_ref[...].astype(f32)                 # (n_param, tm)
    u1 = xp[:sz1, :]                             # (sz1, tm)
    u2 = xp[sz1:, :]                             # (sz2, tm)
    cond_bf = c_ref[...].astype(bf16)            # (cond_sz, tm)  cast once

    def fused_pair(u, out_sz, wh, bh, w0u, w0h, b0, w1, b1):
        # h_cat = [h_s ; h_t]  — one head matmul for the s/t pair.
        h = jnp.tanh(
            jnp.dot(wh[...], cond_bf, preferred_element_type=f32) + bh[...])
        # z_cat = [z_s ; z_t]  — cat([u, h]) @ W0 done as u-part + h-part so no
        # in-kernel concatenate is needed; all operands bf16, f32 accumulate.
        z = jnp.tanh(
            jnp.dot(w0u[...], u.astype(bf16), preferred_element_type=f32)
            + jnp.dot(w0h[...], h.astype(bf16), preferred_element_type=f32)
            + b0[...])
        # st = [s ; t]  — block-diagonal W1 applied in one matmul.
        st = jnp.dot(w1[...], z.astype(bf16), preferred_element_type=f32) + b1[...]
        return st[:out_sz, :], st[out_sz:, :]

    s1, t1 = fused_pair(u2, sz1, whA_ref, bhA_ref, w0uA_ref, w0hA_ref,
                        b0A_ref, w1A_ref, b1A_ref)
    v1 = u1 * jnp.exp(s1) + t1                   # (sz1, tm)

    s2, t2 = fused_pair(v1, sz2, whB_ref, bhB_ref, w0uB_ref, w0hB_ref,
                        b0B_ref, w1B_ref, b1B_ref)
    v2 = u2 * jnp.exp(s2) + t2                   # (sz2, tm)

    # v^T = [v1 ; v2] via two static sublane-sliced, lane-dense stores.
    v_ref[:sz1, :] = v1.astype(v_ref.dtype)
    v_ref[sz1:, :] = v2.astype(v_ref.dtype)
    # Per-row log|det J| as a lane-dense (1, tm) row.
    ld_ref[...] = (jnp.sum(s1, axis=0, keepdims=True)
                   + jnp.sum(s2, axis=0, keepdims=True)).astype(ld_ref.dtype)


# -------------------------------- wrapper ------------------------------------

def _round_up(x, m):
    return (x + m - 1) // m * m


def _cdiv(a, b):
    return -(-a // b)


def _const_spec(x):
    nd = x.ndim
    return pl.BlockSpec(x.shape, lambda i, _nd=nd: (0,) * _nd)


def _fuse_pair(s, t, in_sz):
    """Fuse the (s, t) ConditionalLayer pair into one transposed matmul chain.

    Weight matmul operands are pre-cast to bf16 (single MXU pass); biases stay
    f32 (added after the f32 accumulation).
    """
    bf16, f32 = jnp.bfloat16, jnp.float32
    feat = s["W1"].shape[0]
    head = s["Wh"].shape[1]
    out_sz = s["W1"].shape[1]

    whT = jnp.concatenate([s["Wh"].T, t["Wh"].T], axis=0).astype(bf16)
    bhT = jnp.concatenate([s["bh"].T, t["bh"].T], axis=0).astype(f32)
    w0uT = jnp.concatenate([s["W0"][:in_sz].T, t["W0"][:in_sz].T],
                           axis=0).astype(bf16)
    zfh = jnp.zeros((feat, head), f32)
    w0hT = jnp.concatenate(
        [jnp.concatenate([s["W0"][in_sz:].T, zfh], axis=1),
         jnp.concatenate([zfh, t["W0"][in_sz:].T], axis=1)], axis=0).astype(bf16)
    b0T = jnp.concatenate([s["b0"].T, t["b0"].T], axis=0).astype(f32)
    zof = jnp.zeros((out_sz, feat), f32)
    w1T = jnp.concatenate(
        [jnp.concatenate([s["W1"].T, zof], axis=1),
         jnp.concatenate([zof, t["W1"].T], axis=1)], axis=0).astype(bf16)
    b1T = jnp.concatenate([s["b1"].T, t["b1"].T], axis=0).astype(f32)
    return (whT, bhT, w0uT, w0hT, b0T, w1T, b1T)


@functools.partial(jax.jit, static_argnames=("tm",))
def conditional_affine_forward(param, cond, params, *, tm=16384):
    """param: (..., n_param), cond: (..., cond_sz). Returns (v, log_det)."""
    lead = param.shape[:-1]
    n_param = param.shape[-1]
    cond_sz = cond.shape[-1]
    sz1 = n_param // 2
    sz2 = n_param - sz1

    M = int(np.prod(lead)) if lead else 1

    # Rows-in-lanes layout: permutation folded into an exact gather on the same
    # transpose pass (layout plumbing only, no in-kernel one-hot matmuls).
    xpT = jnp.take(param.reshape(M, n_param), params["perm"], axis=1).T  # (n_param, M)
    cT = cond.reshape(M, cond_sz).T                                      # (cond_sz, M)

    # Tile choice: never over-pad small M (cap at round_up(M, 128)); for larger
    # M use big ~16K-row tiles, rebalanced so the "parallel" grid has >= 2
    # steps (v7x megacore sharding) without gratuitous padding.
    m128 = _round_up(M, 128)
    grid = max(_cdiv(m128, tm), 1)
    if grid == 1 and m128 >= 256:
        grid = 2
    tm_eff = _round_up(_cdiv(m128, grid), 128)
    M_pad = grid * tm_eff
    if M_pad != M:
        xpT = jnp.pad(xpT, ((0, 0), (0, M_pad - M)))
        cT = jnp.pad(cT, ((0, 0), (0, M_pad - M)))

    group_a = _fuse_pair(params["s1"], params["t1"], sz2)   # acts on u2 -> sz1
    group_b = _fuse_pair(params["s2"], params["t2"], sz1)   # acts on v1 -> sz2

    kernel = functools.partial(_affine_block_kernel, sz1=sz1, sz2=sz2)

    def row_spec(nfeat):
        return pl.BlockSpec((nfeat, tm_eff), lambda i: (0, i))

    vT, ld = pl.pallas_call(
        kernel,
        out_shape=(
            jax.ShapeDtypeStruct((n_param, M_pad), param.dtype),   # v^T
            jax.ShapeDtypeStruct((1, M_pad), jnp.float32),         # log_det
        ),
        grid_spec=pltpu.PrefetchScalarGridSpec(
            num_scalar_prefetch=0,
            grid=(grid,),
            in_specs=[
                row_spec(n_param),                         # permuted param^T
                row_spec(cond_sz),                         # cond^T
                *[_const_spec(w) for w in group_a],        # fused s1/t1 weights
                *[_const_spec(w) for w in group_b],        # fused s2/t2 weights
            ],
            out_specs=[
                row_spec(n_param),                         # v^T rows-in-lanes
                row_spec(1),                               # log_det (1, tm) rows
            ],
        ),
        compiler_params=pltpu.CompilerParams(
            dimension_semantics=("parallel",),             # row tiles independent
            vmem_limit_bytes=48 * 1024 * 1024,             # headroom for 16K tiles
        ),
    )(xpT, cT, *group_a, *group_b)

    v = vT[:, :M].T.reshape(*lead, n_param)
    log_det = ld[0, :M].reshape(*lead)
    return v, log_det


# ---------------- parameter construction & pure-JAX references ---------------

def _dense_init(key, in_dim, out_dim):
    kw, kb = jax.random.split(key)
    bound = float(1.0 / np.sqrt(in_dim))
    w = jax.random.uniform(kw, (in_dim, out_dim), jnp.float32, -bound, bound)
    b = jax.random.uniform(kb, (1, out_dim), jnp.float32, -bound, bound)
    return w, b


def _cond_layer_init(key, in_sz, out_sz, cond_sz, head_sz, feat_sz):
    k1, k2, k3 = jax.random.split(key, 3)
    wh, bh = _dense_init(k1, cond_sz, head_sz)
    w0, b0 = _dense_init(k2, in_sz + head_sz, feat_sz)
    w1, b1 = _dense_init(k3, feat_sz, out_sz)
    return dict(Wh=wh, bh=bh, W0=w0, b0=b0, W1=w1, b1=b1)


def make_params(key, n_param, cond_sz, head_sz, feat_sz):
    sz1 = n_param // 2
    sz2 = n_param - sz1
    kp, ks1, kt1, ks2, kt2 = jax.random.split(key, 5)
    perm = jax.random.permutation(kp, n_param)
    return dict(
        perm=perm,
        s1=_cond_layer_init(ks1, sz2, sz1, cond_sz, head_sz, feat_sz),
        t1=_cond_layer_init(kt1, sz2, sz1, cond_sz, head_sz, feat_sz),
        s2=_cond_layer_init(ks2, sz1, sz2, cond_sz, head_sz, feat_sz),
        t2=_cond_layer_init(kt2, sz1, sz2, cond_sz, head_sz, feat_sz),
    )


def reference_forward(param, cond, params, *, mxu_bf16=True):
    """Module-faithful pure-JAX reference.

    mxu_bf16=True mirrors the kernel's numerics policy (matmul operands rounded
    to bf16, f32 accumulation — the standard single-pass TPU MXU treatment);
    mxu_bf16=False is the exact-f32 reference.
    """
    if mxu_bf16:
        def dot(a, b):
            return jnp.dot(a.astype(jnp.bfloat16), b.astype(jnp.bfloat16),
                           preferred_element_type=jnp.float32)
    else:
        def dot(a, b):
            return jnp.dot(a, b, precision=jax.lax.Precision.HIGHEST)

    def cond_layer(u, w):
        h = jnp.tanh(dot(cond, w["Wh"]) + w["bh"])
        x = jnp.concatenate([u, h], axis=-1)
        z = jnp.tanh(dot(x, w["W0"]) + w["b0"])
        return dot(z, w["W1"]) + w["b1"]

    n_param = param.shape[-1]
    sz1 = n_param // 2
    xp = jnp.take(param, params["perm"], axis=-1)
    u1, u2 = xp[..., :sz1], xp[..., sz1:]
    s1 = cond_layer(u2, params["s1"])
    t1 = cond_layer(u2, params["t1"])
    v1 = u1 * jnp.exp(s1) + t1
    s2 = cond_layer(v1, params["s2"])
    t2 = cond_layer(v1, params["t2"])
    v2 = u2 * jnp.exp(s2) + t2
    v = jnp.concatenate([v1, v2], axis=-1)
    log_det = jnp.sum(s1, axis=-1) + jnp.sum(s2, axis=-1)
    return v, log_det


if __name__ == "__main__":
    # Small config: n_param=4 (sz1=sz2=2), cond_sz=8, head_sz=16, feat_sz=32,
    # head_depth=1, depth=2, permutation=True; batch=2, seq=8.
    n_param, cond_sz, head_sz, feat_sz = 4, 8, 16, 32
    batch, seq = 2, 8

    key = jax.random.PRNGKey(0)
    k_param, k_cond, k_w = jax.random.split(key, 3)
    param = jax.random.normal(k_param, (batch, seq, n_param), dtype=jnp.float32)
    cond = jax.random.normal(k_cond, (batch, seq, cond_sz), dtype=jnp.float32)
    params = make_params(k_w, n_param, cond_sz, head_sz, feat_sz)

    v, log_det = conditional_affine_forward(param, cond, params)
    jax.block_until_ready((v, log_det))
    assert v.shape == (batch, seq, n_param) and log_det.shape == (batch, seq)

    # 1) Same-numerics reference (bf16 MXU operand rounding, like the kernel):
    #    only accumulation-order / transcendental-ulp differences remain.
    v_ref, ld_ref = reference_forward(param, cond, params, mxu_bf16=True)
    assert jnp.allclose(v, v_ref, atol=2e-3, rtol=2e-3), "v mismatch (bf16 ref)"
    assert jnp.allclose(log_det, ld_ref, atol=2e-3, rtol=2e-3), "log_det mismatch (bf16 ref)"

    # 2) Exact-f32 module reference: kernel differs only by single-pass bf16
    #    MXU operand rounding, so a generous tolerance applies here.
    v32, ld32 = reference_forward(param, cond, params, mxu_bf16=False)
    assert jnp.allclose(v, v32, atol=5e-2, rtol=5e-2), "v mismatch (f32 ref)"
    assert jnp.allclose(log_det, ld32, atol=5e-2, rtol=5e-2), "log_det mismatch (f32 ref)"

    # TODO(synk): inverse branch (reverse-order coupling) and arbitrary
    # head_depth/depth configs are not implemented in-kernel; this kernel
    # covers the forward pass for head_depth=1, depth=2.
    print("KERNEL_OK")
</pallas_src>

<mosaic_0001>
module attributes {stable_mosaic.version = 11 : i64} {
  func.func @_affine_block_kernel(%arg0: i32, %arg1: memref<4x128xf32, #tpu.memory_space<vmem>>, %arg2: memref<8x128xf32, #tpu.memory_space<vmem>>, %arg3: memref<32x8xbf16, #tpu.memory_space<vmem>>, %arg4: memref<32x1xf32, #tpu.memory_space<vmem>>, %arg5: memref<64x2xbf16, #tpu.memory_space<vmem>>, %arg6: memref<64x32xbf16, #tpu.memory_space<vmem>>, %arg7: memref<64x1xf32, #tpu.memory_space<vmem>>, %arg8: memref<4x64xbf16, #tpu.memory_space<vmem>>, %arg9: memref<4x1xf32, #tpu.memory_space<vmem>>, %arg10: memref<32x8xbf16, #tpu.memory_space<vmem>>, %arg11: memref<32x1xf32, #tpu.memory_space<vmem>>, %arg12: memref<64x2xbf16, #tpu.memory_space<vmem>>, %arg13: memref<64x32xbf16, #tpu.memory_space<vmem>>, %arg14: memref<64x1xf32, #tpu.memory_space<vmem>>, %arg15: memref<4x64xbf16, #tpu.memory_space<vmem>>, %arg16: memref<4x1xf32, #tpu.memory_space<vmem>>, %arg17: memref<4x128xf32, #tpu.memory_space<vmem>>, %arg18: memref<1x128xf32, #tpu.memory_space<vmem>>) attributes {dimension_semantics = [#tpu.dimension_semantics<parallel>], iteration_bounds = array<i64: 1>, scalar_prefetch = 0 : i64, scratch_operands = 0 : i64, tpu.core_type = #tpu.core_type<tc>, window_params = [{transform_indices = @transform_0, window_bounds = array<i64: 4, 128>}, {transform_indices = @transform_1, window_bounds = array<i64: 8, 128>}, {pipeline_mode = #tpu.pipeline_mode<synchronous>, transform_indices = @transform_2, window_bounds = array<i64: 32, 8>}, {pipeline_mode = #tpu.pipeline_mode<synchronous>, transform_indices = @transform_3, window_bounds = array<i64: 32, 1>}, {pipeline_mode = #tpu.pipeline_mode<synchronous>, transform_indices = @transform_4, window_bounds = array<i64: 64, 2>}, {pipeline_mode = #tpu.pipeline_mode<synchronous>, transform_indices = @transform_5, window_bounds = array<i64: 64, 32>}, {pipeline_mode = #tpu.pipeline_mode<synchronous>, transform_indices = @transform_6, window_bounds = array<i64: 64, 1>}, {pipeline_mode = #tpu.pipeline_mode<synchronous>, transform_indices = @transform_7, window_bounds = array<i64: 4, 64>}, {pipeline_mode = #tpu.pipeline_mode<synchronous>, transform_indices = @transform_8, window_bounds = array<i64: 4, 1>}, {pipeline_mode = #tpu.pipeline_mode<synchronous>, transform_indices = @transform_9, window_bounds = array<i64: 32, 8>}, {pipeline_mode = #tpu.pipeline_mode<synchronous>, transform_indices = @transform_10, window_bounds = array<i64: 32, 1>}, {pipeline_mode = #tpu.pipeline_mode<synchronous>, transform_indices = @transform_11, window_bounds = array<i64: 64, 2>}, {pipeline_mode = #tpu.pipeline_mode<synchronous>, transform_indices = @transform_12, window_bounds = array<i64: 64, 32>}, {pipeline_mode = #tpu.pipeline_mode<synchronous>, transform_indices = @transform_13, window_bounds = array<i64: 64, 1>}, {pipeline_mode = #tpu.pipeline_mode<synchronous>, transform_indices = @transform_14, window_bounds = array<i64: 4, 64>}, {pipeline_mode = #tpu.pipeline_mode<synchronous>, transform_indices = @transform_15, window_bounds = array<i64: 4, 1>}, {transform_indices = @transform_16, window_bounds = array<i64: 4, 128>}, {transform_indices = @transform_17, window_bounds = array<i64: 1, 128>}]} {
    %c0 = arith.constant 0 : index
    %c0_0 = arith.constant 0 : index
    %0 = vector.load %arg1[%c0, %c0_0] : memref<4x128xf32, #tpu.memory_space<vmem>>, vector<4x128xf32>
    %1 = vector.extract_strided_slice %0 {offsets = [0, 0], sizes = [2, 128], strides = [1, 1]} : vector<4x128xf32> to vector<2x128xf32>
    %2 = vector.extract_strided_slice %0 {offsets = [2, 0], sizes = [2, 128], strides = [1, 1]} : vector<4x128xf32> to vector<2x128xf32>
    %c0_1 = arith.constant 0 : index
    %c0_2 = arith.constant 0 : index
    %3 = vector.load %arg2[%c0_1, %c0_2] : memref<8x128xf32, #tpu.memory_space<vmem>>, vector<8x128xf32>
    %4 = arith.truncf %3 : vector<8x128xf32> to vector<8x128xbf16>
    %c0_3 = arith.constant 0 : index
    %c0_4 = arith.constant 0 : index
    %5 = vector.load %arg3[%c0_3, %c0_4] : memref<32x8xbf16, #tpu.memory_space<vmem>>, vector<32x8xbf16>
    %cst = arith.constant dense<0.000000e+00> : vector<32x128xf32>
    %6 = tpu.matmul %5, %4, %cst {dimension_numbers = #tpu.dot_dimension_numbers<[1], [0], [0], [1], [0, 0, 1, 1], [], []>} : vector<32x8xbf16>, vector<8x128xbf16>, vector<32x128xf32> -> vector<32x128xf32>
    %c0_5 = arith.constant 0 : index
    %c0_6 = arith.constant 0 : index
    %7 = vector.load %arg4[%c0_5, %c0_6] : memref<32x1xf32, #tpu.memory_space<vmem>>, vector<32x1xf32>
    %8 = vector.broadcast %7 : vector<32x1xf32> to vector<32x128xf32>
    %9 = arith.addf %6, %8 : vector<32x128xf32>
    %10 = math.tanh %9 : vector<32x128xf32>
    %c0_7 = arith.constant 0 : index
    %c0_8 = arith.constant 0 : index
    %11 = vector.load %arg5[%c0_7, %c0_8] : memref<64x2xbf16, #tpu.memory_space<vmem>>, vector<64x2xbf16>
    %12 = arith.truncf %2 : vector<2x128xf32> to vector<2x128xbf16>
    %cst_9 = arith.constant dense<0.000000e+00> : vector<64x128xf32>
    %13 = tpu.matmul %11, %12, %cst_9 {dimension_numbers = #tpu.dot_dimension_numbers<[1], [0], [0], [1], [0, 0, 1, 1], [], []>} : vector<64x2xbf16>, vector<2x128xbf16>, vector<64x128xf32> -> vector<64x128xf32>
    %c0_10 = arith.constant 0 : index
    %c0_11 = arith.constant 0 : index
    %14 = vector.load %arg6[%c0_10, %c0_11] : memref<64x32xbf16, #tpu.memory_space<vmem>>, vector<64x32xbf16>
    %15 = arith.truncf %10 : vector<32x128xf32> to vector<32x128xbf16>
    %cst_12 = arith.constant dense<0.000000e+00> : vector<64x128xf32>
    %16 = tpu.matmul %14, %15, %cst_12 {dimension_numbers = #tpu.dot_dimension_numbers<[1], [0], [0], [1], [0, 0, 1, 1], [], []>} : vector<64x32xbf16>, vector<32x128xbf16>, vector<64x128xf32> -> vector<64x128xf32>
    %17 = arith.addf %13, %16 : vector<64x128xf32>
    %c0_13 = arith.constant 0 : index
    %c0_14 = arith.constant 0 : index
    %18 = vector.load %arg7[%c0_13, %c0_14] : memref<64x1xf32, #tpu.memory_space<vmem>>, vector<64x1xf32>
    %19 = vector.broadcast %18 : vector<64x1xf32> to vector<64x128xf32>
    %20 = arith.addf %17, %19 : vector<64x128xf32>
    %21 = math.tanh %20 : vector<64x128xf32>
    %c0_15 = arith.constant 0 : index
    %c0_16 = arith.constant 0 : index
    %22 = vector.load %arg8[%c0_15, %c0_16] : memref<4x64xbf16, #tpu.memory_space<vmem>>, vector<4x64xbf16>
    %23 = arith.truncf %21 : vector<64x128xf32> to vector<64x128xbf16>
    %cst_17 = arith.constant dense<0.000000e+00> : vector<4x128xf32>
    %24 = tpu.matmul %22, %23, %cst_17 {dimension_numbers = #tpu.dot_dimension_numbers<[1], [0], [0], [1], [0, 0, 1, 1], [], []>} : vector<4x64xbf16>, vector<64x128xbf16>, vector<4x128xf32> -> vector<4x128xf32>
    %c0_18 = arith.constant 0 : index
    %c0_19 = arith.constant 0 : index
    %25 = vector.load %arg9[%c0_18, %c0_19] : memref<4x1xf32, #tpu.memory_space<vmem>>, vector<4x1xf32>
    %26 = vector.broadcast %25 : vector<4x1xf32> to vector<4x128xf32>
    %27 = arith.addf %24, %26 : vector<4x128xf32>
    %28 = vector.extract_strided_slice %27 {offsets = [0, 0], sizes = [2, 128], strides = [1, 1]} : vector<4x128xf32> to vector<2x128xf32>
    %29 = vector.extract_strided_slice %27 {offsets = [2, 0], sizes = [2, 128], strides = [1, 1]} : vector<4x128xf32> to vector<2x128xf32>
    %30 = math.exp %28 : vector<2x128xf32>
    %31 = arith.mulf %1, %30 : vector<2x128xf32>
    %32 = arith.addf %31, %29 : vector<2x128xf32>
    %c0_20 = arith.constant 0 : index
    %c0_21 = arith.constant 0 : index
    %33 = vector.load %arg10[%c0_20, %c0_21] : memref<32x8xbf16, #tpu.memory_space<vmem>>, vector<32x8xbf16>
    %cst_22 = arith.constant dense<0.000000e+00> : vector<32x128xf32>
    %34 = tpu.matmul %33, %4, %cst_22 {dimension_numbers = #tpu.dot_dimension_numbers<[1], [0], [0], [1], [0, 0, 1, 1], [], []>} : vector<32x8xbf16>, vector<8x128xbf16>, vector<32x128xf32> -> vector<32x128xf32>
    %c0_23 = arith.constant 0 : index
    %c0_24 = arith.constant 0 : index
    %35 = vector.load %arg11[%c0_23, %c0_24] : memref<32x1xf32, #tpu.memory_space<vmem>>, vector<32x1xf32>
    %36 = vector.broadcast %35 : vector<32x1xf32> to vector<32x128xf32>
    %37 = arith.addf %34, %36 : vector<32x128xf32>
    %38 = math.tanh %37 : vector<32x128xf32>
    %c0_25 = arith.constant 0 : index
    %c0_26 = arith.constant 0 : index
    %39 = vector.load %arg12[%c0_25, %c0_26] : memref<64x2xbf16, #tpu.memory_space<vmem>>, vector<64x2xbf16>
    %40 = arith.truncf %32 : vector<2x128xf32> to vector<2x128xbf16>
    %cst_27 = arith.constant dense<0.000000e+00> : vector<64x128xf32>
    %41 = tpu.matmul %39, %40, %cst_27 {dimension_numbers = #tpu.dot_dimension_numbers<[1], [0], [0], [1], [0, 0, 1, 1], [], []>} : vector<64x2xbf16>, vector<2x128xbf16>, vector<64x128xf32> -> vector<64x128xf32>
    %c0_28 = arith.constant 0 : index
    %c0_29 = arith.constant 0 : index
    %42 = vector.load %arg13[%c0_28, %c0_29] : memref<64x32xbf16, #tpu.memory_space<vmem>>, vector<64x32xbf16>
    %43 = arith.truncf %38 : vector<32x128xf32> to vector<32x128xbf16>
    %cst_30 = arith.constant dense<0.000000e+00> : vector<64x128xf32>
    %44 = tpu.matmul %42, %43, %cst_30 {dimension_numbers = #tpu.dot_dimension_numbers<[1], [0], [0], [1], [0, 0, 1, 1], [], []>} : vector<64x32xbf16>, vector<32x128xbf16>, vector<64x128xf32> -> vector<64x128xf32>
    %45 = arith.addf %41, %44 : vector<64x128xf32>
    %c0_31 = arith.constant 0 : index
    %c0_32 = arith.constant 0 : index
    %46 = vector.load %arg14[%c0_31, %c0_32] : memref<64x1xf32, #tpu.memory_space<vmem>>, vector<64x1xf32>
    %47 = vector.broadcast %46 : vector<64x1xf32> to vector<64x128xf32>
    %48 = arith.addf %45, %47 : vector<64x128xf32>
    %49 = math.tanh %48 : vector<64x128xf32>
    %c0_33 = arith.constant 0 : index
    %c0_34 = arith.constant 0 : index
    %50 = vector.load %arg15[%c0_33, %c0_34] : memref<4x64xbf16, #tpu.memory_space<vmem>>, vector<4x64xbf16>
    %51 = arith.truncf %49 : vector<64x128xf32> to vector<64x128xbf16>
    %cst_35 = arith.constant dense<0.000000e+00> : vector<4x128xf32>
    %52 = tpu.matmul %50, %51, %cst_35 {dimension_numbers = #tpu.dot_dimension_numbers<[1], [0], [0], [1], [0, 0, 1, 1], [], []>} : vector<4x64xbf16>, vector<64x128xbf16>, vector<4x128xf32> -> vector<4x128xf32>
    %c0_36 = arith.constant 0 : index
    %c0_37 = arith.constant 0 : index
    %53 = vector.load %arg16[%c0_36, %c0_37] : memref<4x1xf32, #tpu.memory_space<vmem>>, vector<4x1xf32>
    %54 = vector.broadcast %53 : vector<4x1xf32> to vector<4x128xf32>
    %55 = arith.addf %52, %54 : vector<4x128xf32>
    %56 = vector.extract_strided_slice %55 {offsets = [0, 0], sizes = [2, 128], strides = [1, 1]} : vector<4x128xf32> to vector<2x128xf32>
    %57 = vector.extract_strided_slice %55 {offsets = [2, 0], sizes = [2, 128], strides = [1, 1]} : vector<4x128xf32> to vector<2x128xf32>
    %58 = math.exp %56 : vector<2x128xf32>
    %59 = arith.mulf %2, %58 : vector<2x128xf32>
    %60 = arith.addf %59, %57 : vector<2x128xf32>
    %c0_38 = arith.constant 0 : index
    %c0_39 = arith.constant 0 : index
    %61 = vector.load %arg17[%c0_38, %c0_39] : memref<4x128xf32, #tpu.memory_space<vmem>>, vector<2x128xf32>
    tpu.vector_store %arg17[%c0_38, %c0_39], %32 {strides = array<i32>} : memref<4x128xf32, #tpu.memory_space<vmem>>, vector<2x128xf32>,
    %c2 = arith.constant 2 : index
    %c0_40 = arith.constant 0 : index
    %62 = vector.load %arg17[%c2, %c0_40] : memref<4x128xf32, #tpu.memory_space<vmem>>, vector<2x128xf32>
    tpu.vector_store %arg17[%c2, %c0_40], %60 {strides = array<i32>} : memref<4x128xf32, #tpu.memory_space<vmem>>, vector<2x128xf32>,
    %cst_41 = arith.constant dense<0.000000e+00> : vector<128xf32>
    %63 = vector.multi_reduction <add>, %28, %cst_41 [0] : vector<2x128xf32> to vector<128xf32>
    %64 = vector.shape_cast %63 : vector<128xf32> to vector<1x128xf32>
    %cst_42 = arith.constant dense<0.000000e+00> : vector<128xf32>
    %65 = vector.multi_reduction <add>, %56, %cst_42 [0] : vector<2x128xf32> to vector<128xf32>
    %66 = vector.shape_cast %65 : vector<128xf32> to vector<1x128xf32>
    %67 = arith.addf %64, %66 : vector<1x128xf32>
    %c0_43 = arith.constant 0 : index
    %c0_44 = arith.constant 0 : index
    %68 = vector.load %arg18[%c0_43, %c0_44] : memref<1x128xf32, #tpu.memory_space<vmem>>, vector<1x128xf32>
    tpu.vector_store %arg18[%c0_43, %c0_44], %67 {strides = array<i32>} : memref<1x128xf32, #tpu.memory_space<vmem>>, vector<1x128xf32>,
    return
  }
  func.func @transform_0(%arg0: i32) -> (i32, i32) {
    %c0_i32 = arith.constant 0 : i32
    %c0_i32_0 = arith.constant 0 : i32
    return %c0_i32, %arg0 : i32, i32
  }
  func.func @transform_1(%arg0: i32) -> (i32, i32) {
    %c0_i32 = arith.constant 0 : i32
    %c0_i32_0 = arith.constant 0 : i32
    return %c0_i32, %arg0 : i32, i32
  }
  func.func @transform_2(%arg0: i32) -> (i32, i32) {
    %c0_i32 = arith.constant 0 : i32
    %c0_i32_0 = arith.constant 0 : i32
    %c0_i32_1 = arith.constant 0 : i32
    return %c0_i32, %c0_i32_0 : i32, i32
  }
  func.func @transform_3(%arg0: i32) -> (i32, i32) {
    %c0_i32 = arith.constant 0 : i32
    %c0_i32_0 = arith.constant 0 : i32
    %c0_i32_1 = arith.constant 0 : i32
    return %c0_i32, %c0_i32_0 : i32, i32
  }
  func.func @transform_4(%arg0: i32) -> (i32, i32) {
    %c0_i32 = arith.constant 0 : i32
    %c0_i32_0 = arith.constant 0 : i32
    %c0_i32_1 = arith.constant 0 : i32
    return %c0_i32, %c0_i32_0 : i32, i32
  }
  func.func @transform_5(%arg0: i32) -> (i32, i32) {
    %c0_i32 = arith.constant 0 : i32
    %c0_i32_0 = arith.constant 0 : i32
    %c0_i32_1 = arith.constant 0 : i32
    return %c0_i32, %c0_i32_0 : i32, i32
  }
  func.func @transform_6(%arg0: i32) -> (i32, i32) {
    %c0_i32 = arith.constant 0 : i32
    %c0_i32_0 = arith.constant 0 : i32
    %c0_i32_1 = arith.constant 0 : i32
    return %c0_i32, %c0_i32_0 : i32, i32
  }
  func.func @transform_7(%arg0: i32) -> (i32, i32) {
    %c0_i32 = arith.constant 0 : i32
    %c0_i32_0 = arith.constant 0 : i32
    %c0_i32_1 = arith.constant 0 : i32
    return %c0_i32, %c0_i32_0 : i32, i32
  }
  func.func @transform_8(%arg0: i32) -> (i32, i32) {
    %c0_i32 = arith.constant 0 : i32
    %c0_i32_0 = arith.constant 0 : i32
    %c0_i32_1 = arith.constant 0 : i32
    return %c0_i32, %c0_i32_0 : i32, i32
  }
  func.func @transform_9(%arg0: i32) -> (i32, i32) {
    %c0_i32 = arith.constant 0 : i32
    %c0_i32_0 = arith.constant 0 : i32
    %c0_i32_1 = arith.constant 0 : i32
    return %c0_i32, %c0_i32_0 : i32, i32
  }
  func.func @transform_10(%arg0: i32) -> (i32, i32) {
    %c0_i32 = arith.constant 0 : i32
    %c0_i32_0 = arith.constant 0 : i32
    %c0_i32_1 = arith.constant 0 : i32
    return %c0_i32, %c0_i32_0 : i32, i32
  }
  func.func @transform_11(%arg0: i32) -> (i32, i32) {
    %c0_i32 = arith.constant 0 : i32
    %c0_i32_0 = arith.constant 0 : i32
    %c0_i32_1 = arith.constant 0 : i32
    return %c0_i32, %c0_i32_0 : i32, i32
  }
  func.func @transform_12(%arg0: i32) -> (i32, i32) {
    %c0_i32 = arith.constant 0 : i32
    %c0_i32_0 = arith.constant 0 : i32
    %c0_i32_1 = arith.constant 0 : i32
    return %c0_i32, %c0_i32_0 : i32, i32
  }
  func.func @transform_13(%arg0: i32) -> (i32, i32) {
    %c0_i32 = arith.constant 0 : i32
    %c0_i32_0 = arith.constant 0 : i32
    %c0_i32_1 = arith.constant 0 : i32
    return %c0_i32, %c0_i32_0 : i32, i32
  }
  func.func @transform_14(%arg0: i32) -> (i32, i32) {
    %c0_i32 = arith.constant 0 : i32
    %c0_i32_0 = arith.constant 0 : i32
    %c0_i32_1 = arith.constant 0 : i32
    return %c0_i32, %c0_i32_0 : i32, i32
  }
  func.func @transform_15(%arg0: i32) -> (i32, i32) {
    %c0_i32 = arith.constant 0 : i32
    %c0_i32_0 = arith.constant 0 : i32
    %c0_i32_1 = arith.constant 0 : i32
    return %c0_i32, %c0_i32_0 : i32, i32
  }
  func.func @transform_16(%arg0: i32) -> (i32, i32) {
    %c0_i32 = arith.constant 0 : i32
    %c0_i32_0 = arith.constant 0 : i32
    return %c0_i32, %arg0 : i32, i32
  }
  func.func @transform_17(%arg0: i32) -> (i32, i32) {
    %c0_i32 = arith.constant 0 : i32
    %c0_i32_0 = arith.constant 0 : i32
    return %c0_i32, %arg0 : i32, i32
  }
}

</mosaic_0001>

<bundles_post_ra>
// kernel: squeeze.1
= control target key start
LH: loop header
LB: loop body
LE: loop exit
PB: predicated region body
PF: predicated region fallthrough
CT: control target
= control target key end

     0   :  { %s77_s0 = inlined_call_operand.vmem [shape: f32[16], index: 0, kind: input, shape index: {}]   ;;  %s78_s1 = inlined_call_operand.hbm [shape: f32[2,8], index: 1, kind: output, shape index: {}]  }
   0x1   :  { %v6_v0 = vld [vmem:[%s77_s0] sm:$0x1] }
   0x2   :  { %2 = vsyncpa [#allocation1], 0  ;;  %7 = vst [vmem:[#allocation3] sm:$0x1] %v6_v0  ;;  %vm9_vm0 = vcmask 64512   ;;  %s59_s0 = smov 120  }
   0x3   :  { %s60_s8 = smov [#allocation0]  }
   0x4   :  { %s29_s9 = sshll.u32 %s60_s8, 4  ;;  %s30_s9 = int_to_ptr.vmem [resolvable:$true] %s29_s9 }
   0x5   :  { %s37_s10 = scalar_lea.vmem %s30_s9, 32  ;;  %p42_p1 = scmp.lt.s32.totalorder %s30_s9, %s30_s9 }
   0x6   :  { %p38_p0 = scmp.ne.s32.totalorder %s30_s9, %s37_s10  ;;  %p43_p2 = scmp.lt.s32.totalorder %s37_s10, %s37_s10 }
   0x8   :  { %p44_p3 = por %p43_p2, %p42_p1 }
   0x9   :  { %v11_v1 = vld [vmem:[#allocation3] sm:$0x1]  }
   0xa   :  { %v8_v2 = vld [vmem:[#allocation3] sm:$0x1]   ;;  %12 = vrot.lane.b32.xlu0 %v11_v1, %s59_s0  ;;  %p45_p4 = pnand %p44_p3, %p38_p0 }
   0xb   :  { %10 = vst.msk [vmem:[#allocation2] sm:$0x1] %vm9_vm0, %v8_v2  }
  0x7c   :  { %v13_v3 = vpop.permute.xlu0 %12  }
  0x7d   :  { %16 = vst.msk [vmem:[#allocation2 + $0x1] sm:$0x1] %vm9_vm0, %v13_v3  }
  0x84   :  { %v21_v4 = vld [vmem:[#allocation2] sm:$0x3] }
  0x85   :  { %24 = vst [vmem:[#allocation0] sm:$0x3] %v21_v4 }
  0x86   :  { %48 = shalt.err (!%p45_p4)
}
  0x87   :  { %32 = dma.vmem_to_hbm [thread:$0]  %s30_s9, 32, %s78_s1, [#allocation1]  }
  0x88   :  { %57 = dma.done.wait [#allocation1], 32  }
  0x89   :  { %58 = vsyncadd [#allocation1], 4294967264 }
  0x8a   :  { %34 = vsyncpa [#allocation1], 1 }

// kernel: conditional_affine_forward.1
= control target key start
LH: loop header
LB: loop body
LE: loop exit
PB: predicated region body
PF: predicated region fallthrough
CT: control target
= control target key end

     0   :  { %vm104_vm0 = vcmask 1043456   ;;  %vm97_vm1 = vcmask 64512   ;;  %v1214_v3 = vmov 0   ;;  %vm313_vm2 = vcmask 1040384   ;;  %s1521_s1 = inlined_call_operand.vmem [shape: f32[8,128], index: 1, kind: input, shape index: {}]   ;;  %s1522_s2 = inlined_call_operand.vmem [shape: bf16[32,8], index: 2, kind: input, shape index: {}]   ;;  %s1523_s0 = inlined_call_operand.vmem [shape: f32[4,128], index: 0, kind: input, shape index: {}]   ;;  %s1524_s4 = inlined_call_operand.vmem [shape: bf16[64,2], index: 4, kind: input, shape index: {}]   ;;  %s1525_s3 = inlined_call_operand.vmem [shape: f32[32,1], index: 3, kind: input, shape index: {}]   ;;  %s1526_s9 = inlined_call_operand.vmem [shape: bf16[32,8], index: 9, kind: input, shape index: {}]   ;;  %s1527_s6 = inlined_call_operand.vmem [shape: f32[64,1], index: 6, kind: input, shape index: {}]   ;;  %s1528_s8 = inlined_call_operand.vmem [shape: f32[4,1], index: 8, kind: input, shape index: {}]   ;;  %s1529_s10 = inlined_call_operand.vmem [shape: f32[32,1], index: 10, kind: input, shape index: {}]   ;;  %s1530_s13 = inlined_call_operand.vmem [shape: f32[64,1], index: 13, kind: input, shape index: {}]   ;;  %s1531_s15 = inlined_call_operand.vmem [shape: f32[4,1], index: 15, kind: input, shape index: {}]   ;;  %s1532_s5 = inlined_call_operand.vmem [shape: bf16[64,32], index: 5, kind: input, shape index: {}]   ;;  %s1533_s7 = inlined_call_operand.vmem [shape: bf16[4,64], index: 7, kind: input, shape index: {}]   ;;  %s1534_s12 = inlined_call_operand.vmem [shape: bf16[64,32], index: 12, kind: input, shape index: {}]   ;;  %s1535_s11 = inlined_call_operand.vmem [shape: bf16[64,2], index: 11, kind: input, shape index: {}]   ;;  %s1536_s16 = inlined_call_operand.vmem [shape: f32[4,128], index: 16, kind: output, shape index: {0}]   ;;  %s1537_s14 = inlined_call_operand.vmem [shape: bf16[4,64], index: 14, kind: input, shape index: {}]   ;;  %s1538_s17 = inlined_call_operand.vmem [shape: f32[1,128], index: 17, kind: output, shape index: {1}]  }
   0x1   :  { %1540 = sst [smem:[#allocation2_spill]] %s1521_s1  ;;  %1140 = vset.pattern.permute.xlu0 %v1214_v3  ;;  %1141 = vset.pattern.permute.xlu1 %v1214_v3  ;;  %v1316_v4 = vld [vmem:[%s1523_s0] sm:$0xf]  ;;  %vm300_vm3 = vcmask 15360   ;;  %v65_v10 = vld [vmem:[%s1525_s3 + $0x10] sm:$0xff]  ;;  %v66_v13 = vld [vmem:[%s1525_s3 + $0x18] sm:$0xff] }
   0x2   :  { %1541 = sst [smem:[#allocation3_spill]] %s1522_s2  ;;  %v169_v7 = vpack.c.bf16 %v1316_v4, %v1316_v4  ;;  %v1144_v8 = vld [vmem:[%s1524_s4] sm:$0xff]   ;;  %79 = vperm.xlu0 %1140, %v65_v10   ;;  %v1145_v14 = vld [vmem:[%s1524_s4 + $0x8] sm:$0xff]   ;;  %v1146_v16 = vld [vmem:[%s1524_s4 + $0x10] sm:$0xff]   ;;  %vm200_vm4 = vcmask 261120   ;;  %vm1216_vm5 = vmmov 0  }
   0x3   :  { %s1542_s26 = sld [smem:[#allocation2_spill]]  ;;  %v63_v12 = vld [vmem:[%s1525_s3] sm:$0xff]  ;;  %v64_v15 = vld [vmem:[%s1525_s3 + $0x8] sm:$0xff]  ;;  %v388_v17 = vld [vmem:[%s1527_s6 + $0x30] sm:$0xff]  ;;  %vm457_vm6 = vcmask 523264   ;;  %vm948_vm7 = vcmask 1041408  }
   0x4   :  { %s1543_s29 = sld [smem:[#allocation3_spill]]  ;;  %v299_v9 = vrot.slane %v169_v7, 1  ;;  %69 = vperm.xlu1 %1141, %v63_v12   ;;  %v389_v18 = vld [vmem:[%s1527_s6 + $0x38] sm:$0xff]  ;;  %v386_v19 = vld [vmem:[%s1527_s6 + $0x20] sm:$0xff]  ;;  %v387_v21 = vld [vmem:[%s1527_s6 + $0x28] sm:$0xff] }
   0x5   :  { %v1147_v20 = vld [vmem:[%s1524_s4 + $0x18] sm:$0xff]   ;;  %v1148_v22 = vld [vmem:[%s1526_s9] sm:$0xff]   ;;  %v384_v23 = vld [vmem:[%s1527_s6 + $0x10] sm:$0xff] }
   0x6   :  { %v315_v11 = vsel %vm313_vm2, %v299_v9, 0  ;;  %84 = vperm.xlu0 %1140, %v66_v13   ;;  %v385_v24 = vld [vmem:[%s1527_s6 + $0x18] sm:$0xff]  ;;  %v382_v25 = vld [vmem:[%s1527_s6] sm:$0xff]  ;;  %v1149_v26 = vld [vmem:[%s1526_s9 + $0x8] sm:$0xff]  }
   0x7   :  { %v383_v27 = vld [vmem:[%s1527_s6 + $0x8] sm:$0xff]  ;;  %v451_v28 = vld [vmem:[%s1528_s8] sm:$0xf]  ;;  %v514_v29 = vld [vmem:[%s1529_s10 + $0x10] sm:$0xff] }
   0x8   :  { %74 = vperm.xlu1 %1141, %v64_v15   ;;  %v515_v30 = vld [vmem:[%s1529_s10 + $0x18] sm:$0xff]  ;;  %v512_v31 = vld [vmem:[%s1529_s10] sm:$0xff]  ;;  %v513_v32 = vld [vmem:[%s1529_s10 + $0x8] sm:$0xff] }
   0x9   :  { %v57_v0 = vld [vmem:[%s1542_s26] sm:$0xff]  ;;  %v827_v33 = vld [vmem:[%s1530_s13 + $0x30] sm:$0xff]  ;;  %v828_v34 = vld [vmem:[%s1530_s13 + $0x38] sm:$0xff] }
   0xa   :  { %v58_v1 = vpack.c.bf16 %v57_v0, %v57_v0  ;;  %v1142_v2 = vld [vmem:[%s1543_s29] sm:$0xff]   ;;  %v1143_v6 = vld [vmem:[%s1543_s29 + $0x8] sm:$0xff]   ;;  %422 = vperm.xlu0 %1140, %v388_v17   ;;  %v823_v37 = vld [vmem:[%s1530_s13 + $0x10] sm:$0xff]  ;;  %v1215_v0 = vmov 0.0  }
   0xb   :  { %1055 = vmatprep.mubr.msk.bf16.mxu0 %vm97_vm1, %v1142_v2  ;;  %v825_v35 = vld [vmem:[%s1530_s13 + $0x20] sm:$0xff]  ;;  %v826_v36 = vld [vmem:[%s1530_s13 + $0x28] sm:$0xff]  ;;  %v824_v38 = vld [vmem:[%s1530_s13 + $0x18] sm:$0xff] }
   0xc   :  { %1133 = vmatprep.subr.msk.bf16.mxu0 %vm104_vm0, %v58_v1  ;;  %v106_v5 = vsel %vm104_vm0, %v58_v1, 0  ;;  %427 = vperm.xlu1 %1141, %v389_v18   ;;  %v821_v39 = vld [vmem:[%s1530_s13] sm:$0xff]  ;;  %v822_v40 = vld [vmem:[%s1530_s13 + $0x8] sm:$0xff]  ;;  %v1152_v62 = vld [vmem:[%s1532_s5 + $0x10] sm:$0xff]  }
   0xd   :  { %1054 = vmatpush3.bf16.msra.mxu0 %v106_v5  ;;  %v890_v41 = vld [vmem:[%s1531_s15] sm:$0xf]  ;;  %v1151_v61 = vld [vmem:[%s1532_s5 + $0x8] sm:$0xff]   ;;  %v1153_v63 = vld [vmem:[%s1532_s5 + $0x18] sm:$0xff]  }
   0xe   :  { %1134 = vmatprep.subr.msk.bf16.mxu0 %vm313_vm2, %v299_v9  ;;  %412 = vperm.xlu0 %1140, %v386_v19   ;;  %v1150_v42 = vld [vmem:[%s1532_s5] sm:$0xff]  }
   0xf   :  { %1063 = vmatprep.mubr.msk.bf16.mxu1 %vm200_vm4, %v1150_v42 }
  0x10   :  { %1056 = vmatmul.mubr.msk.bf16.vlgmr.msra.gmra.mxu0 %vm97_vm1, %v1143_v6  ;;  %417 = vperm.xlu1 %1141, %v387_v21  }
  0x11   :  { %1072 = vmatpush3.bf16.msra.mxu0 %v315_v11  ;;  %1073 = vmatprep.mubr.msk.bf16.mxu0 %vm300_vm3, %v1144_v8 }
  0x12   :  { %1135 = vmatprep.subr.msk.bf16.mxu0 %vm104_vm0, %v58_v1  ;;  %402 = vperm.xlu0 %1140, %v384_v23  }
  0x14   :  { %407 = vperm.xlu1 %1141, %v385_v24  }
  0x16   :  { %392 = vperm.xlu0 %1140, %v382_v25  }
  0x18   :  { %1074 = vmatmul.mubr.msk.bf16.vlgmr.msra.gmra.mxu0 %vm300_vm3, %v1145_v14  ;;  %397 = vperm.xlu1 %1141, %v383_v27  }
  0x19   :  { %1077 = vmatprep.mubr.msk.bf16.mxu0 %vm300_vm3, %v1146_v16  ;;  %1094 = vmatpush3.bf16.msra.mxu0 %v106_v5 }
  0x1a   :  { %454 = vperm.xlu0 %1140, %v451_v28  }
  0x1c   :  { %528 = vperm.xlu1 %1141, %v514_v29  }
  0x1e   :  { %533 = vperm.xlu0 %1140, %v515_v30  }
  0x20   :  { %1078 = vmatmul.mubr.msk.bf16.gmra.mxu0 %vm300_vm3, %v1147_v20  ;;  %518 = vperm.xlu1 %1141, %v512_v31  }
  0x21   :  { %1095 = vmatprep.mubr.msk.bf16.mxu0 %vm97_vm1, %v1148_v22 }
  0x22   :  { %523 = vperm.xlu0 %1140, %v513_v32  }
  0x24   :  { %861 = vperm.xlu1 %1141, %v827_v33  }
  0x26   :  { %866 = vperm.xlu0 %1140, %v828_v34  }
  0x28   :  { %1096 = vmatmul.mubr.msk.bf16.vlgmr.msra.gmra.mxu0 %vm97_vm1, %v1149_v26  ;;  %851 = vperm.xlu1 %1141, %v825_v35  }
  0x2a   :  { %856 = vperm.xlu0 %1140, %v826_v36  }
  0x2c   :  { %841 = vperm.xlu1 %1141, %v823_v37  }
  0x2e   :  { %846 = vperm.xlu0 %1140, %v824_v38  }
  0x30   :  { %831 = vperm.xlu1 %1141, %v821_v39  }
  0x32   :  { %836 = vperm.xlu0 %1140, %v822_v40  }
  0x34   :  { %893 = vperm.xlu1 %1141, %v890_v41  }
  0x7d   :  { %v80_v43 = vpop.permute.xlu0 %79 }
  0x7f   :  { %v70_v44 = vpop.permute.xlu1 %69 }
  0x81   :  { %v85_v48 = vpop.permute.xlu0 %84 }
  0x83   :  { %v75_v52 = vpop.permute.xlu1 %74 }
  0x85   :  { %v423_v5 = vpop.permute.xlu0 %422 }
  0x87   :  { %v428_v9 = vpop.permute.xlu1 %427 }
  0x89   :  { %v413_v7 = vpop.permute.xlu0 %412 }
  0x8b   :  { %v418_v15 = vpop.permute.xlu1 %417 }
  0x8d   :  { %v403_v13 = vpop.permute.xlu0 %402 }
  0x8f   :  { %v408_v23 = vpop.permute.xlu1 %407 }
  0x91   :  { %v393_v19 = vpop.permute.xlu0 %392 }
  0x93   :  { %v398_v34 = vpop.permute.xlu1 %397 }
  0x95   :  { %v1451_v30 = vpop.permute.xlu0 %454 }
  0x99   :  { %v534_v41 = vpop.permute.xlu0 %533 }
  0xd0   :  { %v1057_v45 = vpop.f32.mrf.mxu0 }
  0xd1   :  { %v151_v46 = vadd.f32 %v1057_v45, %v80_v43  ;;  %v529_v45 = vpop.permute.xlu1 %528 }
  0xd2   :  { %v142_v47 = vpop.f32.mrf.mxu0 }
  0xd3   :  { %v143_v49 = vadd.f32 %v142_v47, %v70_v44  ;;  %1162 = vtanh.f32 %v151_v46 }
  0xd4   :  { %v1058_v50 = vpop.f32.mrf.mxu0 }
  0xd5   :  { %v154_v51 = vadd.f32 %v1058_v50, %v85_v48 }
  0xd6   :  { %v145_v53 = vpop.f32.mrf.mxu0 }
  0xd7   :  { %1164 = vtanh.f32 %v154_v51  ;;  %v146_v54 = vadd.f32 %v145_v53, %v75_v52  ;;  %v524_v51 = vpop.permute.xlu0 %523 }
  0xd8   :  { %1166 = vtanh.f32 %v143_v49  ;;  %v1075_v1 = vpop.f32.mrf.mxu0 }
  0xd9   :  { %1168 = vtanh.f32 %v146_v54  ;;  %v519_v54 = vpop.permute.xlu1 %518 }
  0xda   :  { %v351_v2 = vpop.f32.mrf.mxu0 }
  0xdc   :  { %v1076_v3 = vpop.f32.mrf.mxu0 }
  0xde   :  { %v354_v6 = vpop.f32.mrf.mxu0 }
  0xe0   :  { %v1163_v55 = vpop.eup %1162  ;;  %v1079_v8 = vpop.f32.mrf.mxu0 }
  0xe2   :  { %v367_v11 = vpop.f32.mrf.mxu0 }
  0xe4   :  { %v1165_v56 = vpop.eup %1164  ;;  %v1080_v16 = vpop.f32.mrf.mxu0 }
  0xe5   :  { %v1167_v57 = vpop.eup %1166  ;;  %v179_v58 = vpack.c.bf16 %v1165_v56, %v1163_v55 }
  0xe6   :  { %v1169_v59 = vpop.eup %1168  ;;  %v370_v20 = vpop.f32.mrf.mxu0 }
  0xe7   :  { %1059 = vmatprep.subr.bf16.mxu1 %v179_v58  ;;  %v178_v60 = vpack.c.bf16 %v1169_v59, %v1167_v57 }
  0xe8   :  { %1060 = vmatpush3.bf16.msra.mxu1 %v179_v58  ;;  %v1097_v26 = vpop.f32.mrf.mxu0 }
  0xe9   :  { %1061 = vmatprep.subr.bf16.mxu1 %v178_v60  ;;  %v595_v50 = vadd.f32 %v1097_v26, %v529_v45 }
  0xea   :  { %v586_v35 = vpop.f32.mrf.mxu0 }
  0xeb   :  { %v587_v56 = vadd.f32 %v586_v35, %v519_v54 }
  0xec   :  { %1062 = vmatpush3.bf16.msra.mxu1 %v178_v60  ;;  %v1098_v42 = vpop.f32.mrf.mxu0 }
  0xed   :  { %1081 = vmatprep.subr.bf16.mxu1 %v1215_v0  ;;  %v598_v47 = vadd.f32 %v1098_v42, %v534_v41  ;;  %v862_v41 = vpop.permute.xlu1 %861 }
  0xee   :  { %v589_v48 = vpop.f32.mrf.mxu0 }
  0xef   :  { %1064 = vmatmul.mubr.msk.bf16.vlgmr.msra.gmra.mxu1 %vm200_vm4, %v1151_v61  ;;  %v590_v52 = vadd.f32 %v589_v48, %v524_v51 }
  0xf0   :  { %1067 = vmatprep.mubr.msk.bf16.mxu1 %vm200_vm4, %v1152_v62 }
  0xf7   :  { %1068 = vmatmul.mubr.msk.bf16.gmra.mxu1 %vm200_vm4, %v1153_v63 }
  0xf8   :  { %1089 = vmatprep.mubr.msk.bf16.mxu1 %vm1216_vm5, %v1215_v0 }
 0x1af   :  { %v1065_v10 = vpop.f32.mrf.mxu1 }
 0x1b0   :  { %v360_v36 = vadd.f32 %v1075_v1, %v1065_v10 }
 0x1b1   :  { %v247_v12 = vpop.f32.mrf.mxu1 }
 0x1b2   :  { %v432_v43 = vadd.f32 %v403_v13, %v360_v36  ;;  %v352_v44 = vadd.f32 %v351_v2, %v247_v12  ;;  %v1154_v12 = vld [vmem:[%s1534_s12] sm:$0xff]   ;;  %v1155_v13 = vld [vmem:[%s1534_s12 + $0x8] sm:$0xff]  }
 0x1b3   :  { %v1066_v14 = vpop.f32.mrf.mxu1 }
 0x1b4   :  { %v363_v31 = vadd.f32 %v1076_v3, %v1066_v14  ;;  %v430_v49 = vadd.f32 %v393_v19, %v352_v44  ;;  %v1156_v14 = vld [vmem:[%s1535_s11] sm:$0xff]  }
 0x1b5   :  { %v250_v17 = vpop.f32.mrf.mxu1  ;;  %1113 = vmatprep.mubr.msk.bf16.mxu0 %vm300_vm3, %v1156_v14 }
 0x1b6   :  { %v433_v39 = vadd.f32 %v408_v23, %v363_v31  ;;  %v355_v40 = vadd.f32 %v354_v6, %v250_v17  ;;  %v1161_v31 = vld [vmem:[%s1535_s11 + $0x18] sm:$0xff]  }
 0x1b7   :  { %v1069_v18 = vpop.f32.mrf.mxu1 }
 0x1b8   :  { %v376_v21 = vadd.f32 %v1079_v8, %v1069_v18  ;;  %v431_v46 = vadd.f32 %v398_v34, %v355_v40 }
 0x1b9   :  { %v263_v22 = vpop.f32.mrf.mxu1 }
 0x1ba   :  { %v436_v24 = vadd.f32 %v423_v5, %v376_v21  ;;  %v368_v27 = vadd.f32 %v367_v11, %v263_v22 }
 0x1bb   :  { %v1070_v25 = vpop.f32.mrf.mxu1 }
 0x1bc   :  { %v379_v28 = vadd.f32 %v1080_v16, %v1070_v25  ;;  %1170 = vtanh.f32 %v436_v24  ;;  %v434_v37 = vadd.f32 %v413_v7, %v368_v27  ;;  %v1159_v16 = vld [vmem:[%s1534_s12 + $0x18] sm:$0xff]  }
 0x1bd   :  { %v266_v29 = vpop.f32.mrf.mxu1 }
 0x1be   :  { %v437_v32 = vadd.f32 %v428_v9, %v379_v28  ;;  %v371_v33 = vadd.f32 %v370_v20, %v266_v29  ;;  %v446_v9 = vld [vmem:[%s1533_s7] sm:$0x3]  ;;  %v1157_v29 = vld [vmem:[%s1535_s11 + $0x8] sm:$0xff]  }
 0x1c0   :  { %1172 = vtanh.f32 %v437_v32  ;;  %v435_v38 = vadd.f32 %v418_v15, %v371_v33  ;;  %v1158_v15 = vld [vmem:[%s1534_s12 + $0x10] sm:$0xff]  }
 0x1c2   :  { %1174 = vtanh.f32 %v435_v38 }
 0x1c3   :  { %1176 = vtanh.f32 %v434_v37 }
 0x1c4   :  { %1178 = vtanh.f32 %v433_v39  ;;  %v867_v39 = vpop.permute.xlu0 %866 }
 0x1c5   :  { %1180 = vtanh.f32 %v432_v43 }
 0x1c6   :  { %1182 = vtanh.f32 %v431_v46 }
 0x1c7   :  { %1184 = vtanh.f32 %v598_v47 }
 0x1c8   :  { %1186 = vtanh.f32 %v430_v49  ;;  %v857_v45 = vpop.permute.xlu0 %856  ;;  %v852_v49 = vpop.permute.xlu1 %851 }
 0x1c9   :  { %v1171_v53 = vpop.eup %1170  ;;  %1188 = vtanh.f32 %v595_v50 }
 0x1ca   :  { %1190 = vtanh.f32 %v590_v52 }
 0x1cb   :  { %1192 = vtanh.f32 %v587_v56 }
 0x1cd   :  { %v1173_v55 = vpop.eup %1172 }
 0x1ce   :  { %v450_v57 = vpack.c.bf16 %v1173_v55, %v1171_v53 }
 0x1cf   :  { %v1175_v58 = vpop.eup %1174 }
 0x1d0   :  { %1082 = vmatpush3.bf16.msra.mxu1 %v450_v57  ;;  %v1177_v59 = vpop.eup %1176 }
 0x1d1   :  { %1083 = vmatprep.subr.bf16.mxu1 %v1215_v0  ;;  %v449_v60 = vpack.c.bf16 %v1175_v58, %v1177_v59  ;;  %v1179_v61 = vpop.eup %1178  ;;  %v847_v59 = vpop.permute.xlu0 %846 }
 0x1d2   :  { %v1181_v62 = vpop.eup %1180 }
 0x1d3   :  { %v448_v63 = vpack.c.bf16 %v1179_v61, %v1181_v62  ;;  %v1183_v1 = vpop.eup %1182 }
 0x1d4   :  { %1084 = vmatpush3.bf16.msra.mxu1 %v449_v60  ;;  %v1185_v2 = vpop.eup %1184 }
 0x1d5   :  { %1085 = vmatprep.subr.bf16.mxu1 %v1215_v0  ;;  %v1187_v3 = vpop.eup %1186 }
 0x1d6   :  { %v1189_v5 = vpop.eup %1188  ;;  %v447_v6 = vpack.c.bf16 %v1183_v1, %v1187_v3 }
 0x1d7   :  { %v623_v7 = vpack.c.bf16 %v1185_v2, %v1189_v5  ;;  %v1191_v8 = vpop.eup %1190 }
 0x1d8   :  { %1086 = vmatpush3.bf16.msra.mxu1 %v448_v63  ;;  %v1193_v10 = vpop.eup %1192  ;;  %v842_v63 = vpop.permute.xlu1 %841 }
 0x1d9   :  { %1087 = vmatprep.subr.bf16.mxu1 %v1215_v0  ;;  %v622_v11 = vpack.c.bf16 %v1191_v8, %v1193_v10 }
 0x1dc   :  { %1088 = vmatpush3.bf16.msra.mxu1 %v447_v6  ;;  %v837_v6 = vpop.permute.xlu0 %836  ;;  %v832_v8 = vpop.permute.xlu1 %831 }
 0x1dd   :  { %1099 = vmatprep.subr.bf16.mxu1 %v623_v7 }
 0x1df   :  { %1090 = vmatmul.mubr.msk.bf16.vlgmr.msra.gmra.mxu1 %vm457_vm6, %v446_v9 }
 0x1e0   :  { %1100 = vmatpush3.bf16.msra.mxu1 %v623_v7  ;;  %1103 = vmatprep.mubr.msk.bf16.mxu1 %vm200_vm4, %v1154_v12 }
 0x1e1   :  { %1101 = vmatprep.subr.bf16.mxu1 %v622_v11 }
 0x1e4   :  { %1102 = vmatpush3.bf16.msra.mxu1 %v622_v11 }
 0x1e5   :  { %1121 = vmatprep.subr.bf16.mxu1 %v1215_v0 }
 0x1e7   :  { %1104 = vmatmul.mubr.msk.bf16.vlgmr.msra.gmra.mxu1 %vm200_vm4, %v1155_v13 }
 0x1e8   :  { %1107 = vmatprep.mubr.msk.bf16.mxu1 %vm200_vm4, %v1158_v15 }
 0x1ef   :  { %1108 = vmatmul.mubr.msk.bf16.gmra.mxu1 %vm200_vm4, %v1159_v16 }
 0x1f0   :  { %1129 = vmatprep.mubr.msk.bf16.mxu1 %vm1216_vm5, %v1215_v0 }
 0x29f   :  { %v495_v17 = vpop.f32.mrf.mxu1 }
 0x2a0   :  { %v1484_v18 = vadd.f32 %v495_v17, %v1451_v30  ;;  %v1160_v30 = vld [vmem:[%s1535_s11 + $0x10] sm:$0xff]  }
 0x2a1   :  { %v1091_v19 = vpop.f32.mrf.mxu1 }
 0x2a2   :  { %v501_v20 = vmul.f32 1.442695, %v1484_v18  ;;  %v505_v25 = vrot.slane %v1484_v18, 2 }
 0x2a3   :  { %v498_v21 = vpop.f32.mrf.mxu1 }
 0x2a4   :  { %1194 = vpow2.f32 %v501_v20 }
 0x2a5   :  { %v1092_v22 = vpop.f32.mrf.mxu1 }
 0x2a7   :  { %v1105_v32 = vpop.f32.mrf.mxu1 }
 0x2a9   :  { %v690_v33 = vpop.f32.mrf.mxu1 }
 0x2ab   :  { %v1106_v34 = vpop.f32.mrf.mxu1 }
 0x2ad   :  { %v693_v35 = vpop.f32.mrf.mxu1 }
 0x2af   :  { %v1109_v38 = vpop.f32.mrf.mxu1 }
 0x2b1   :  { %v1195_v23 = vpop.eup %1194  ;;  %v706_v43 = vpop.f32.mrf.mxu1 }
 0x2b2   :  { %v503_v24 = vmul.f32 %v1195_v23, %v1316_v4  ;;  %v885_v23 = vld [vmem:[%s1537_s14] sm:$0x3] }
 0x2b3   :  { %v1110_v47 = vpop.f32.mrf.mxu1 }
 0x2b4   :  { %v507_v26 = vadd.f32 %v505_v25, %v503_v24  ;;  %v949_v24 = vsel %vm948_vm7, %v1484_v18, 0.0 }
 0x2b5   :  { %v709_v54 = vpop.f32.mrf.mxu1  ;;  %v950_v25 = vrot.slane %v949_v24, 4 }
 0x2b6   :  { %v613_v27 = vpack.c.bf16 %v507_v26, %v507_v26  ;;  %946 = vst [vmem:[%s1536_s16] sm:$0x3] %v507_v26 }
 0x2b7   :  { %v951_v26 = vadd.f32 %v950_v25, %v949_v24 }
 0x2b8   :  { %1136 = vmatprep.subr.msk.bf16.mxu0 %vm313_vm2, %v613_v27  ;;  %v754_v28 = vsel %vm313_vm2, %v613_v27, 0  ;;  %v894_v27 = vpop.permute.xlu1 %893 }
 0x2b9   :  { %1112 = vmatpush3.bf16.msra.mxu0 %v754_v28 }
 0x2bc   :  { %1114 = vmatmul.mubr.msk.bf16.vlgmr.msra.gmra.mxu0 %vm300_vm3, %v1157_v29 }
 0x2bd   :  { %1117 = vmatprep.mubr.msk.bf16.mxu0 %vm300_vm3, %v1160_v30  ;;  %v952_v30 = vrot.slane %v951_v26, 2 }
 0x2c4   :  { %1118 = vmatmul.mubr.msk.bf16.gmra.mxu0 %vm300_vm3, %v1161_v31 }
 0x37c   :  { %v1115_v36 = vpop.f32.mrf.mxu0 }
 0x37d   :  { %v799_v60 = vadd.f32 %v1115_v36, %v1105_v32 }
 0x37e   :  { %v790_v37 = vpop.f32.mrf.mxu0 }
 0x37f   :  { %v871_v3 = vadd.f32 %v842_v63, %v799_v60  ;;  %v791_v5 = vadd.f32 %v790_v37, %v690_v33 }
 0x380   :  { %v1116_v40 = vpop.f32.mrf.mxu0 }
 0x381   :  { %v802_v56 = vadd.f32 %v1116_v40, %v1106_v34  ;;  %v869_v9 = vadd.f32 %v832_v8, %v791_v5 }
 0x382   :  { %v793_v42 = vpop.f32.mrf.mxu0 }
 0x383   :  { %v872_v1 = vadd.f32 %v847_v59, %v802_v56  ;;  %v794_v2 = vadd.f32 %v793_v42, %v693_v35  ;;  %v953_v35 = vadd.f32 %v952_v30, %v951_v26 }
 0x384   :  { %v1119_v44 = vpop.f32.mrf.mxu0 }
 0x385   :  { %v815_v46 = vadd.f32 %v1119_v44, %v1109_v38  ;;  %v870_v7 = vadd.f32 %v837_v6, %v794_v2 }
 0x386   :  { %v806_v48 = vpop.f32.mrf.mxu0 }
 0x387   :  { %v875_v50 = vadd.f32 %v862_v41, %v815_v46  ;;  %v807_v52 = vadd.f32 %v806_v48, %v706_v43 }
 0x388   :  { %v1120_v51 = vpop.f32.mrf.mxu0 }
 0x389   :  { %v818_v53 = vadd.f32 %v1120_v51, %v1110_v47  ;;  %1196 = vtanh.f32 %v875_v50  ;;  %v873_v61 = vadd.f32 %v852_v49, %v807_v52 }
 0x38a   :  { %v809_v55 = vpop.f32.mrf.mxu0 }
 0x38b   :  { %v876_v57 = vadd.f32 %v867_v39, %v818_v53  ;;  %v810_v58 = vadd.f32 %v809_v55, %v709_v54  ;;  %v954_v39 = vrot.slane %v953_v35, 1 }
 0x38d   :  { %1198 = vtanh.f32 %v876_v57  ;;  %v874_v62 = vadd.f32 %v857_v45, %v810_v58  ;;  %v955_v18 = vadd.f32 %v954_v39, %v953_v35 }
 0x38f   :  { %1200 = vtanh.f32 %v874_v62 }
 0x390   :  { %1202 = vtanh.f32 %v873_v61 }
 0x391   :  { %1204 = vtanh.f32 %v872_v1 }
 0x392   :  { %1206 = vtanh.f32 %v871_v3 }
 0x393   :  { %1208 = vtanh.f32 %v870_v7 }
 0x394   :  { %1210 = vtanh.f32 %v869_v9 }
 0x396   :  { %v1197_v10 = vpop.eup %1196 }
 0x39a   :  { %v1199_v11 = vpop.eup %1198 }
 0x39b   :  { %v889_v12 = vpack.c.bf16 %v1199_v11, %v1197_v10 }
 0x39c   :  { %v1201_v13 = vpop.eup %1200 }
 0x39d   :  { %1122 = vmatpush3.bf16.msra.mxu1 %v889_v12  ;;  %v1203_v14 = vpop.eup %1202 }
 0x39e   :  { %1123 = vmatprep.subr.bf16.mxu1 %v1215_v0  ;;  %v888_v15 = vpack.c.bf16 %v1201_v13, %v1203_v14  ;;  %v1205_v16 = vpop.eup %1204 }
 0x39f   :  { %v1207_v17 = vpop.eup %1206 }
 0x3a0   :  { %v887_v19 = vpack.c.bf16 %v1205_v16, %v1207_v17  ;;  %v1209_v20 = vpop.eup %1208 }
 0x3a1   :  { %1124 = vmatpush3.bf16.msra.mxu1 %v888_v15  ;;  %v1211_v21 = vpop.eup %1210 }
 0x3a2   :  { %1125 = vmatprep.subr.bf16.mxu1 %v1215_v0  ;;  %v886_v22 = vpack.c.bf16 %v1209_v20, %v1211_v21 }
 0x3a5   :  { %1126 = vmatpush3.bf16.msra.mxu1 %v887_v19 }
 0x3a6   :  { %1127 = vmatprep.subr.bf16.mxu1 %v1215_v0 }
 0x3a9   :  { %1128 = vmatpush3.bf16.msra.mxu1 %v886_v22 }
 0x3ac   :  { %1130 = vmatmul.mubr.msk.bf16.vlgmr.msra.gmra.mxu1 %vm457_vm6, %v885_v23 }
 0x46c   :  { %v933_v28 = vpop.f32.mrf.mxu1 }
 0x46d   :  { %v934_v29 = vadd.f32 %v933_v28, %v894_v27 }
 0x46e   :  { %v1131_v31 = vpop.f32.mrf.mxu1 }
 0x46f   :  { %v939_v32 = vmul.f32 1.442695, %v934_v29  ;;  %v956_v0 = vsel %vm948_vm7, %v934_v29, 0.0 }
 0x470   :  { %v957_v33 = vrot.slane %v956_v0, 4  ;;  %v936_v34 = vpop.f32.mrf.mxu1 }
 0x471   :  { %1212 = vpow2.f32 %v939_v32 }
 0x472   :  { %v958_v36 = vadd.f32 %v957_v33, %v956_v0  ;;  %v1132_v37 = vpop.f32.mrf.mxu1 }
 0x474   :  { %v959_v38 = vrot.slane %v958_v36, 2 }
 0x476   :  { %v960_v40 = vadd.f32 %v959_v38, %v958_v36 }
 0x478   :  { %v961_v41 = vrot.slane %v960_v40, 1 }
 0x47a   :  { %v962_v42 = vadd.f32 %v961_v41, %v960_v40 }
 0x47c   :  { %v963_v43 = vadd.f32 %v962_v42, %v955_v18 }
 0x47e   :  { %v1213_v44 = vpop.eup %1212  ;;  %964 = vst [vmem:[%s1538_s17] sm:$0x1] %v963_v43 }
 0x47f   :  { %v942_v45 = vrot.slane %v1213_v44, 6 }
 0x481   :  { %v944_v46 = vmul.f32 %v942_v45, %v1316_v4 }
 0x483   :  { %v945_v47 = vadd.f32 %v944_v46, %v934_v29 }
 0x485   :  { %947 = vst [vmem:[%s1536_s16] sm:$0xc] %v945_v47 }

</bundles_post_ra>
